<compile_context>
chip_gen: v7x
topology: tpu7x:2x2x1
jax: 0.10.0
libtpu: 0.0.40
codegen_flags: <defaults>
</compile_context>

<pallas_src>
import jax
import jax.numpy as jnp
from jax.experimental import pallas as pl
from jax.experimental.pallas import tpu as pltpu

_EPS = 1e-5                      # PyTorch BatchNorm2d default
_LANE = 128                      # TPU lane width
_VMEM_LIMIT = 32 * 1024 * 1024   # explicit scoped-VMEM budget (safe on v5e/v6e/v7x)


def _round_up(x, m):
    return ((x + m - 1) // m) * m


# ----------------------------------------------------------------------------
# Pallas kernels
# ----------------------------------------------------------------------------
def _conv_bn_relu_kernel(x_ref, w_ref, b_ref, o_ref):
    """o[b] = relu(W @ x[b] + bias) for every batch element in the block.

    x_ref: (B, Cin, Lt), w_ref: (Cout, Cin), b_ref: (Cout, 1),
    o_ref: (B, Cout, Lt).  BatchNorm is folded into W / bias; Lt is a
    multiple of 128 so loads/stores are unmasked.  Static unroll over B.
    """
    w = w_ref[...]
    bias = b_ref[...]
    for i in range(x_ref.shape[0]):
        y = jnp.dot(w, x_ref[i], preferred_element_type=jnp.float32) + bias
        o_ref[i] = jnp.maximum(y, 0.0)


def _fuse_conv2_kernel(x_ref, fu_ref, lfu_ref, w_ref, o_ref):
    """o[b] = W2 @ (x[b] + fu[b] + lfu[b]).

    The three-way elementwise add never round-trips through HBM.  The lfu
    block is the same for both H-halves of the grid (replication via the
    BlockSpec index_map), so the tiled LFU tensor is never materialised.
    """
    w = w_ref[...]
    for i in range(x_ref.shape[0]):
        s = x_ref[i] + fu_ref[i] + lfu_ref[i]
        o_ref[i] = jnp.dot(w, s, preferred_element_type=jnp.float32)


# ----------------------------------------------------------------------------
# Wrappers
# ----------------------------------------------------------------------------
def _fold_bn(w, bn, eps=_EPS):
    """Fold inference-mode BatchNorm into a bias-free 1x1-conv weight."""
    gamma, beta, mean, var = bn
    scale = gamma * jax.lax.rsqrt(var + eps)
    return scale[:, None] * w, (beta - scale * mean)


def _conv_bn_relu(x3d, w, bias, *, lane_tile=_LANE):
    """relu(w @ x + bias) over a (B, Cin, L) slab, grid-tiled over the lane axis."""
    B, Cin, L = x3d.shape
    Cout = w.shape[0]
    assert L % lane_tile == 0 and lane_tile % _LANE == 0
    grid = (L // lane_tile,)                       # >= 2 parallel steps (v7x)
    bias2d = bias.reshape(Cout, 1)
    flops = 2 * B * Cout * Cin * L + 2 * B * Cout * L
    bytes_accessed = 4 * (B * Cin * L + Cout * Cin + Cout + B * Cout * L)
    return pl.pallas_call(
        _conv_bn_relu_kernel,
        grid=grid,
        in_specs=[
            pl.BlockSpec((B, Cin, lane_tile), lambda i: (0, 0, i)),
            pl.BlockSpec((Cout, Cin), lambda i: (0, 0)),
            pl.BlockSpec((Cout, 1), lambda i: (0, 0)),
        ],
        out_specs=pl.BlockSpec((B, Cout, lane_tile), lambda i: (0, 0, i)),
        out_shape=jax.ShapeDtypeStruct((B, Cout, L), jnp.float32),
        compiler_params=pltpu.CompilerParams(
            dimension_semantics=("parallel",),
            vmem_limit_bytes=_VMEM_LIMIT),
        cost_estimate=pl.CostEstimate(
            flops=flops, transcendentals=0, bytes_accessed=bytes_accessed),
    )(x3d, w, bias2d)


def fourier_unit(x, w_conv, bn, eps=_EPS):
    """FourierUnit forward.  x: (B, C, H, W) f32; w_conv: (2C, 2C); bn: 4x(2C,)."""
    B, C, H, W = x.shape
    wf, bf = _fold_bn(w_conv, bn, eps)
    # PyTorch interleaves (real, imag) per channel: ch = 2*c + {0:r, 1:i}.
    # Permute rows/cols to [all-real | all-imag] block order so the spectral
    # conv becomes a single (2C x 2C) @ (2C, S) matmul.  Host-side, tiny.
    perm = jnp.concatenate([jnp.arange(0, 2 * C, 2), jnp.arange(1, 2 * C, 2)])
    w_blk = wf[perm][:, perm]
    b_blk = bf[perm]

    # TODO(synk): rfft2/irfft2 have no Pallas primitive; use XLA's TPU FFT.
    ffted = jnp.fft.rfft2(x, norm="ortho")                  # (B, C, H, Wh) c64
    Wh = ffted.shape[-1]
    S = H * Wh
    S_pad = _round_up(S, _LANE)                             # lane-dense stores
    x_spec = jnp.concatenate(
        [jnp.real(ffted).reshape(B, C, S), jnp.imag(ffted).reshape(B, C, S)],
        axis=1)                                             # (B, 2C, S)
    x_spec = jnp.pad(x_spec, ((0, 0), (0, 0), (0, S_pad - S)))

    y = _conv_bn_relu(x_spec, w_blk, b_blk, lane_tile=_LANE)  # (B, 2C, S_pad)
    y = y[:, :, :S]                        # drop pad columns before irfft2
    yc = jax.lax.complex(y[:, :C], y[:, C:]).reshape(B, C, H, Wh)
    return jnp.fft.irfft2(yc, s=(H, W), norm="ortho")       # (B, C, H, W)


def spectral_transform(x, params, eps=_EPS):
    """SpectralTransform.forward (stride=1, groups=1, enable_lfu=True).

    x: (B, Cin, H, W) f32.
    params: (w1, bn1, w_fu, bn_fu, w_lfu, bn_lfu, w2).
    Returns (B, Cout, H, W).
    """
    w1, bn1, w_fu, bn_fu, w_lfu, bn_lfu, w2 = params
    B, Cin, H, W = x.shape
    C1 = w1.shape[0]            # out_channels // 2
    Cout = w2.shape[0]          # out_channels
    HW = H * W

    # ---- conv1 + BN + ReLU (folded, single kernel) --------------------------
    w1f, b1f = _fold_bn(w1, bn1, eps)
    x1 = _conv_bn_relu(x.reshape(B, Cin, HW), w1f, b1f)      # (B, C1, HW)
    x1_4d = x1.reshape(B, C1, H, W)

    # ---- global Fourier unit -------------------------------------------------
    fu_out = fourier_unit(x1_4d, w_fu, bn_fu, eps).reshape(B, C1, HW)

    # ---- local Fourier unit (LFU) -------------------------------------------
    # Quadrant split as a single reshape/transpose (no HBM concats); channel
    # order = w_idx*(2*c4) + h_idx*c4 + c, matching torch split/cat.
    c4 = C1 // 4
    hs, ws = H // 2, W // 2
    xs = x1_4d[:, :c4].reshape(B, c4, 2, hs, 2, ws)
    xs = jnp.transpose(xs, (0, 4, 2, 1, 3, 5)).reshape(B, 4 * c4, hs, ws)
    xs = fourier_unit(xs, w_lfu, bn_lfu, eps)                # (B, C1, hs, ws)
    # Replicate along W once (cheap: tensor is 4x smaller than x1).  The H
    # replication is handled by the fuse kernel's BlockSpec below, so the full
    # (B, C1, H, W) tile never touches HBM.
    xs = jnp.tile(xs, (1, 1, 1, 2)).reshape(B, C1, hs * W)   # (B, C1, hs*W)

    # ---- fused 3-way add + conv2 (grid over the two H-halves) ---------------
    half = hs * W
    assert half % _LANE == 0, "H/2 * W must be a multiple of 128"
    flops = 2 * B * Cout * C1 * HW + 2 * B * C1 * HW
    bytes_accessed = 4 * (2 * B * C1 * HW + B * C1 * half + Cout * C1
                          + B * Cout * HW)
    out = pl.pallas_call(
        _fuse_conv2_kernel,
        grid=(H // hs,),                                     # = 2 halves
        in_specs=[
            pl.BlockSpec((B, C1, half), lambda q: (0, 0, q)),    # x1
            pl.BlockSpec((B, C1, half), lambda q: (0, 0, q)),    # fu_out
            pl.BlockSpec((B, C1, half), lambda q: (0, 0, 0)),    # lfu: same block
            pl.BlockSpec((Cout, C1), lambda q: (0, 0)),          # w2
        ],
        out_specs=pl.BlockSpec((B, Cout, half), lambda q: (0, 0, q)),
        out_shape=jax.ShapeDtypeStruct((B, Cout, HW), jnp.float32),
        compiler_params=pltpu.CompilerParams(
            dimension_semantics=("parallel",),
            vmem_limit_bytes=_VMEM_LIMIT),
        cost_estimate=pl.CostEstimate(
            flops=flops, transcendentals=0, bytes_accessed=bytes_accessed),
    )(x1, fu_out, xs, w2)
    return out.reshape(B, Cout, H, W)


# ----------------------------------------------------------------------------
# Pure-JAX reference (mirrors the PyTorch forward, inference-mode BN)
# ----------------------------------------------------------------------------
def _conv1x1_ref(x, w):
    return jnp.einsum("oc,bchw->bohw", w, x)


def _bn_ref(x, bn, eps=_EPS):
    g, b, m, v = bn
    inv = jax.lax.rsqrt(v + eps)
    return (g * inv)[None, :, None, None] * (x - m[None, :, None, None]) \
        + b[None, :, None, None]


def _fourier_unit_ref(x, w, bn, eps=_EPS):
    B, C, H, W = x.shape
    ff = jnp.fft.rfft2(x, norm="ortho")
    ff = jnp.stack([ff.real, ff.imag], axis=-1)              # (B,C,H,Wh,2)
    ff = jnp.transpose(ff, (0, 1, 4, 2, 3)).reshape(B, 2 * C, H, -1)
    y = jax.nn.relu(_bn_ref(_conv1x1_ref(ff, w), bn, eps))
    y = y.reshape(B, C, 2, H, -1).transpose(0, 1, 3, 4, 2)
    yc = y[..., 0] + 1j * y[..., 1]
    return jnp.fft.irfft2(yc, s=(H, W), norm="ortho")


def spectral_transform_ref(x, params, eps=_EPS):
    w1, bn1, w_fu, bn_fu, w_lfu, bn_lfu, w2 = params
    x1 = jax.nn.relu(_bn_ref(_conv1x1_ref(x, w1), bn1, eps))
    out_fu = _fourier_unit_ref(x1, w_fu, bn_fu, eps)
    B, c, h, w = x1.shape
    xs = jnp.concatenate(jnp.split(x1[:, :c // 4], 2, axis=-2), axis=1)
    xs = jnp.concatenate(jnp.split(xs, 2, axis=-1), axis=1)
    xs = _fourier_unit_ref(xs, w_lfu, bn_lfu, eps)
    xs = jnp.tile(xs, (1, 1, 2, 2))
    return _conv1x1_ref(x1 + out_fu + xs, w2)


# ----------------------------------------------------------------------------
if __name__ == "__main__":
    # Module config: in_channels=8, out_channels=16, stride=1, groups=1,
    # enable_lfu=True  ->  C1 = out_channels//2 = 8 (divisible by 4 for LFU).
    B, Cin, H, W = 2, 8, 16, 16
    Cout = 16
    C1 = Cout // 2

    keys = jax.random.split(jax.random.PRNGKey(0), 16)

    def make_bn(k_g, k_b, k_m, k_v, c):
        gamma = 1.0 + 0.1 * jax.random.normal(k_g, (c,), jnp.float32)
        beta = 0.1 * jax.random.normal(k_b, (c,), jnp.float32)
        mean = 0.1 * jax.random.normal(k_m, (c,), jnp.float32)
        var = jax.random.uniform(k_v, (c,), jnp.float32, 0.5, 1.5)
        return (gamma, beta, mean, var)

    w1 = 0.2 * jax.random.normal(keys[0], (C1, Cin), jnp.float32)
    bn1 = make_bn(keys[1], keys[2], keys[3], keys[4], C1)
    w_fu = 0.2 * jax.random.normal(keys[5], (2 * C1, 2 * C1), jnp.float32)
    bn_fu = make_bn(keys[6], keys[7], keys[8], keys[9], 2 * C1)
    w_lfu = 0.2 * jax.random.normal(keys[10], (2 * C1, 2 * C1), jnp.float32)
    bn_lfu = make_bn(keys[11], keys[12], keys[13], keys[14], 2 * C1)
    w2 = 0.2 * jax.random.normal(keys[15], (Cout, C1), jnp.float32)
    params = (w1, bn1, w_fu, bn_fu, w_lfu, bn_lfu, w2)

    x = jax.random.normal(jax.random.PRNGKey(0), (B, Cin, H, W), jnp.float32)

    out = spectral_transform(x, params)
    out = jax.block_until_ready(out)

    ref = spectral_transform_ref(x, params)
    assert out.shape == ref.shape == (B, Cout, H, W)
    assert jnp.allclose(out, ref, rtol=1e-4, atol=1e-4), (
        float(jnp.max(jnp.abs(out - ref))))

    print("KERNEL_OK")
</pallas_src>

<mosaic_0001>
module attributes {stable_mosaic.version = 11 : i64} {
  func.func @_conv_bn_relu_kernel(%arg0: i32, %arg1: memref<2x8x128xf32, #tpu.memory_space<vmem>>, %arg2: memref<8x8xf32, #tpu.memory_space<vmem>>, %arg3: memref<8x1xf32, #tpu.memory_space<vmem>>, %arg4: memref<2x8x128xf32, #tpu.memory_space<vmem>>) attributes {dimension_semantics = [#tpu.dimension_semantics<parallel>], iteration_bounds = array<i64: 2>, scalar_prefetch = 0 : i64, scratch_operands = 0 : i64, tpu.core_type = #tpu.core_type<tc>, window_params = [{transform_indices = @transform_0, window_bounds = array<i64: 2, 8, 128>}, {pipeline_mode = #tpu.pipeline_mode<synchronous>, transform_indices = @transform_1, window_bounds = array<i64: 8, 8>}, {pipeline_mode = #tpu.pipeline_mode<synchronous>, transform_indices = @transform_2, window_bounds = array<i64: 8, 1>}, {transform_indices = @transform_3, window_bounds = array<i64: 2, 8, 128>}]} {
    %c0 = arith.constant 0 : index
    %c0_0 = arith.constant 0 : index
    %0 = vector.load %arg2[%c0, %c0_0] : memref<8x8xf32, #tpu.memory_space<vmem>>, vector<8x8xf32>
    %c0_1 = arith.constant 0 : index
    %c0_2 = arith.constant 0 : index
    %1 = vector.load %arg3[%c0_1, %c0_2] : memref<8x1xf32, #tpu.memory_space<vmem>>, vector<8x1xf32>
    %c0_3 = arith.constant 0 : index
    %c0_4 = arith.constant 0 : index
    %c0_5 = arith.constant 0 : index
    %2 = vector.load %arg1[%c0_3, %c0_4, %c0_5] : memref<2x8x128xf32, #tpu.memory_space<vmem>>, vector<1x8x128xf32>
    %3 = vector.shape_cast %2 : vector<1x8x128xf32> to vector<8x128xf32>
    %cst = arith.constant dense<0.000000e+00> : vector<8x128xf32>
    %4 = tpu.matmul %0, %3, %cst {dimension_numbers = #tpu.dot_dimension_numbers<[1], [0], [0], [1], [0, 0, 1, 1], [], []>} : vector<8x8xf32>, vector<8x128xf32>, vector<8x128xf32> -> vector<8x128xf32>
    %5 = vector.broadcast %1 : vector<8x1xf32> to vector<8x128xf32>
    %6 = arith.addf %4, %5 : vector<8x128xf32>
    %cst_6 = arith.constant 0.000000e+00 : f32
    %7 = vector.broadcast %cst_6 : f32 to vector<8x128xf32>
    %8 = arith.maximumf %6, %7 : vector<8x128xf32>
    %c0_7 = arith.constant 0 : index
    %c0_8 = arith.constant 0 : index
    %c0_9 = arith.constant 0 : index
    %9 = vector.load %arg4[%c0_7, %c0_8, %c0_9] : memref<2x8x128xf32, #tpu.memory_space<vmem>>, vector<1x8x128xf32>
    %10 = vector.shape_cast %9 : vector<1x8x128xf32> to vector<8x128xf32>
    %11 = vector.shape_cast %8 : vector<8x128xf32> to vector<1x8x128xf32>
    tpu.vector_store %arg4[%c0_7, %c0_8, %c0_9], %11 {strides = array<i32>} : memref<2x8x128xf32, #tpu.memory_space<vmem>>, vector<1x8x128xf32>,
    %c1 = arith.constant 1 : index
    %c0_10 = arith.constant 0 : index
    %c0_11 = arith.constant 0 : index
    %12 = vector.load %arg1[%c1, %c0_10, %c0_11] : memref<2x8x128xf32, #tpu.memory_space<vmem>>, vector<1x8x128xf32>
    %13 = vector.shape_cast %12 : vector<1x8x128xf32> to vector<8x128xf32>
    %cst_12 = arith.constant dense<0.000000e+00> : vector<8x128xf32>
    %14 = tpu.matmul %0, %13, %cst_12 {dimension_numbers = #tpu.dot_dimension_numbers<[1], [0], [0], [1], [0, 0, 1, 1], [], []>} : vector<8x8xf32>, vector<8x128xf32>, vector<8x128xf32> -> vector<8x128xf32>
    %15 = vector.broadcast %1 : vector<8x1xf32> to vector<8x128xf32>
    %16 = arith.addf %14, %15 : vector<8x128xf32>
    %cst_13 = arith.constant 0.000000e+00 : f32
    %17 = vector.broadcast %cst_13 : f32 to vector<8x128xf32>
    %18 = arith.maximumf %16, %17 : vector<8x128xf32>
    %c1_14 = arith.constant 1 : index
    %c0_15 = arith.constant 0 : index
    %c0_16 = arith.constant 0 : index
    %19 = vector.load %arg4[%c1_14, %c0_15, %c0_16] : memref<2x8x128xf32, #tpu.memory_space<vmem>>, vector<1x8x128xf32>
    %20 = vector.shape_cast %19 : vector<1x8x128xf32> to vector<8x128xf32>
    %21 = vector.shape_cast %18 : vector<8x128xf32> to vector<1x8x128xf32>
    tpu.vector_store %arg4[%c1_14, %c0_15, %c0_16], %21 {strides = array<i32>} : memref<2x8x128xf32, #tpu.memory_space<vmem>>, vector<1x8x128xf32>,
    return
  }
  func.func @transform_0(%arg0: i32) -> (i32, i32, i32) {
    %c0_i32 = arith.constant 0 : i32
    %c0_i32_0 = arith.constant 0 : i32
    %c0_i32_1 = arith.constant 0 : i32
    return %c0_i32, %c0_i32_0, %arg0 : i32, i32, i32
  }
  func.func @transform_1(%arg0: i32) -> (i32, i32) {
    %c0_i32 = arith.constant 0 : i32
    %c0_i32_0 = arith.constant 0 : i32
    %c0_i32_1 = arith.constant 0 : i32
    return %c0_i32, %c0_i32_0 : i32, i32
  }
  func.func @transform_2(%arg0: i32) -> (i32, i32) {
    %c0_i32 = arith.constant 0 : i32
    %c0_i32_0 = arith.constant 0 : i32
    %c0_i32_1 = arith.constant 0 : i32
    return %c0_i32, %c0_i32_0 : i32, i32
  }
  func.func @transform_3(%arg0: i32) -> (i32, i32, i32) {
    %c0_i32 = arith.constant 0 : i32
    %c0_i32_0 = arith.constant 0 : i32
    %c0_i32_1 = arith.constant 0 : i32
    return %c0_i32, %c0_i32_0, %arg0 : i32, i32, i32
  }
}

</mosaic_0001>

<bundles_post_ra>
// kernel: tpu_custom_call.1
= control target key start
LH: loop header
LB: loop body
LE: loop exit
PB: predicated region body
PF: predicated region fallthrough
CT: control target
= control target key end

     0   :  { %8 = vsyncpa [#allocation3], 0  ;;  %s818_s0 = inlined_call_operand.hbm [shape: f32[2,8,256], index: 0, kind: input, shape index: {}]   ;;  %s819_s1 = inlined_call_operand.vmem [shape: f32[8,8], index: 1, kind: input, shape index: {}]   ;;  %s820_s2 = inlined_call_operand.vmem [shape: f32[8,1], index: 2, kind: input, shape index: {}]   ;;  %s821_s3 = inlined_call_operand.hbm [shape: f32[2,8,256], index: 3, kind: output, shape index: {}]  }
   0x1   :  { %10 = vsyncpa [#allocation3 + $0x1], 0 }
   0x2   :  { %11 = vsyncpa [#allocation4], 0 }
   0x3   :  { %13 = vsyncpa [#allocation4 + $0x1], 0  ;;  %s648_s12 = smov 0   ;;  %s650_s13 = smov 0  }
   0x4   :  { %s652_s14 = smov 0   ;;  %s654_s15 = smov 0  }
   0x5 LB: > { %s669_s16 = sadd.s32 4294967295, %s615_s15   ;;  %s433_s17 = sadd.s32 4294967294, %s615_s15   ;;  %s615_s15 = sphi %s654_s15, %s835_s15   ;;  %s611_s14 = sphi %s652_s14, %s834_s14   ;;  %s607_s13 = sphi %s650_s13, %s833_s13   ;;  %s603_s12 = sphi %s648_s12, %s832_s12  }
   0x6   : > { %s673_s18 = sadd.s32 1, %s615_s15   ;;  %s26_s19 = sadd.s32 1, %s611_s14 }
   0x7   : > { %s23_s20 = ssub.s32 %s615_s15, %s673_s18  ;;  %p33_p0 = scmp.ne.s32.totalorder %s611_s14, %s607_s13 }
   0x8   : > { %p24_p1 = scmp.eq.s32.totalorder %s23_s20, 0  ;;  %p34_p2 = scmp.eq.s32.totalorder %s615_s15, 0 }
   0x9   : > { %p39_p3 = scmp.ne.s32.totalorder %s607_s13, %s603_s12  ;;  %p40_p4 = scmp.eq.s32.totalorder %s669_s16, 0 }
   0xa   : > { %s685_s21 = scalar_select %p24_p1, %s611_s14, %s26_s19  }
   0xb   : > { %p687_p5 = por %p34_p2, %p33_p0  ;;  %p691_p6 = por %p40_p4, %p39_p3 }
   0xc   : > { %p105_p7 = scmp.eq.s32.totalorder %s669_s16, 1  ;;  %p111_p8 = scmp.eq.s32.totalorder %s433_s17, 1 }
   0xd   : > { %p475_p10 = scmp.lt.s32.totalorder %s615_s15, 2  ;;  %s137_s26 = sand.u32 1, %s611_s14  }
   0xe   : > { %p698_p11 = por %p105_p7, %p33_p0  ;;  %p702_p12 = por %p111_p8, %p39_p3 }
   0xf   : > { %s437_s27 = sshll.u32 %s615_s15, 7  ;;  %s436_s28 = sshll.u32 %s137_s26, 4 }
  0x10   : > { %s825_s24 = scalar_select %p698_p11, 1, 0 }
  0x11   : > { %s826_s25 = scalar_select %p702_p12, 1, 0 }
  0x12   : > { %s711_s4 = scalar_lea.hbm %s818_s0, %s437_s27  ;;  %s141_s5 = scalar_lea.vmem [#allocation2], %s436_s28 }
  0x13   : > { %s147_s6 = sshll.u32 %s141_s5, 4  ;;  %p715_p13 = pnand %p475_p10, %p687_p5  ;;  %s719_s6 = int_to_ptr.vmem [resolvable:$true] %s147_s6 }
  0x14   : > { %s722_s8 = scalar_lea.sflag [#allocation3], %s137_s26  ;;  %s519_s9 = scalar_lea.hbm %s711_s4, 256 }
  0x15   : > { %p520_p1 = scmp.ne.s32.totalorder %s711_s4, %s519_s9  ;;  %p521_p2 = pneg %p715_p13 }
  0x16   : > { %s524_s17 = scalar_lea.hbm %s818_s0, 512  ;;  %p525_p5 = scmp.lt.u32.totalorder %s711_s4, %s818_s0 }
  0x17   : > { %p522_p3 = pnand %p521_p2, %p520_p1  ;;  %p526_p7 = scmp.lt.u32.totalorder %s524_s17, %s519_s9 }
  0x18   : > { %p528_p10 = scmp.lt.u32.totalorder %s519_s9, %s711_s4 }
  0x19   : > { %p523_p4 = pneg %p522_p3  ;;  %p527_p8 = por %p526_p7, %p525_p5 }
  0x1b   : > { %p529_p9 = por %p528_p10, %p527_p8 }
  0x1d   : > { %p530_p0 = pnand %p529_p9, %p523_p4 }
  0x1f   : > { %533 = shalt.err (!%p530_p0)
}
  0x20   : > { %s534_s22 = scalar_lea.vmem %s719_s6, 256  ;;  %s617_s26 = smov [#allocation2]  }
  0x21   : > { %p535_p1 = scmp.ne.s32.totalorder %s719_s6, %s534_s22  ;;  %s539_s27 = sshll.u32 %s617_s26, 4  ;;  %s540_s27 = int_to_ptr.vmem [resolvable:$false] %s539_s27 }
  0x22   : > { %s541_s28 = scalar_lea.vmem %s540_s27, 512  ;;  %p542_p11 = scmp.lt.s32.totalorder %s719_s6, %s540_s27 }
  0x23   : > { %p537_p3 = pnand %p535_p1, %p521_p2  ;;  %p543_p5 = scmp.lt.s32.totalorder %s541_s28, %s534_s22 }
  0x25   : > { %p538_p12 = pneg %p537_p3  ;;  %p544_p7 = por %p543_p5, %p542_p11 }
  0x27   : > { %p545_p8 = pnand %p544_p7, %p538_p12 }
  0x29   : > { %548 = shalt.err (!%p545_p8)
}
  0x2a   : > { %s618_s29 = smov 256   ;;  %s619_s30 = smov 128  }
  0x2b   : > { %s620_s5 = smov 8   ;;  %p155_p9 = scmp.lt.s32.totalorder %s615_s15, 3 }
  0x2c   : > { %470 = dma.hbm_to_vmem [thread:$0]  (!%p715_p13), %s711_s4, 256, %s719_s6, %s722_s8, %s618_s29, %s619_s30, %s620_s5  }
  0x2d   : > { %p828_p0 = scmp.ge.s32.totalorder %s615_s15, 1 }
  0x2f   : > { %p156_p2 = pnand %p828_p0, %p155_p9 }
  0x30   : > { %s754_s9 = sand.u32 (!%p156_p2), 1, %s607_s13  }
  0x31   : > { %159 = sbr.rel (%p156_p2) target bundleno = 294 (0x126), region = 32  ;;  %s439_s10 = sshll.u32 (!%p156_p2), %s754_s9, 4 }
  0x32   : > { %s162_s11 = scalar_lea.sflag (!%p156_p2), [#allocation3], %s754_s9  ;;  %s165_s17 = scalar_lea.vmem (!%p156_p2), [#allocation2], %s439_s10 }
  0x38   : > { %594 = dma.done.wait (%p691_p6), %s162_s11, 256  }
  0x39   : > { %596 = vsyncadd (%p691_p6), %s162_s11, 4294967040  ;;  %v621_v0 = vmov 0.0   ;;  %vm622_vm0 = vmmov 0   ;;  %v623_v1 = vmov 0   ;;  %vm196_vm1 = vcmask 64512   ;;  %v190_v2 = vld [vmem:[%s165_s17] sm:$0xff] }
  0x3a   : > { %453 = vmatprep.subr.mxu0 %v621_v0  ;;  %458 = vmatprep.subr.mxu1 %v621_v0  ;;  %v442_v3 = vld [vmem:[%s165_s17 + $0x8] sm:$0xff]  ;;  %v188_v4 = vld [vmem:[%s819_s1] sm:$0xff]  ;;  %s187_s8 = scalar_lea.vmem [#allocation5], %s439_s10  ;;  %s446_s20 = sshll.u32 %s669_s16, 7 }
  0x3b   : > { %455 = vmatprep.mubr.msk.f32.mxu0 %vm622_vm0, %v621_v0  ;;  %460 = vmatprep.mubr.msk.f32.mxu1 %vm622_vm0, %v621_v0  ;;  %v189_v5 = vld [vmem:[%s820_s2] sm:$0xff]  ;;  %s360_s19 = sshll.u32 %s187_s8, 4  ;;  %s774_s27 = scalar_lea.hbm %s821_s3, %s446_s20  ;;  %s769_s19 = int_to_ptr.vmem [resolvable:$true] %s360_s19 }
  0x3c   : > { %518 = vset.pattern.permute.xlu0 %v623_v1  ;;  %454 = vmatpush3.msra.mxu0 %v190_v2  ;;  %s348_s16 = scalar_lea.sflag [#allocation4], %s754_s9  ;;  %s549_s28 = scalar_lea.vmem %s769_s19, 256 }
  0x3d   : > { %459 = vmatpush3.msra.mxu1 %v442_v3  ;;  %456 = vmatmul.mubr.msk.f32.vlgmr.msra.gmra.mrb[0].mxu0 %vm196_vm1, %v188_v4  ;;  %p550_p6 = scmp.ne.s32.totalorder %s769_s19, %s549_s28  ;;  %p829_p11 = scmp.ne.s32.totalorder %s825_s24, 0 }
  0x3e   : > { %461 = vmatmul.mubr.msk.f32.vlgmr.msra.gmra.mrb[0].mxu1 %vm196_vm1, %v188_v4  ;;  %193 = vperm.xlu0 %518, %v189_v5   ;;  %s624_s29 = smov [#allocation5]  }
  0x3f   : > { %p551_p12 = pnand %p550_p6, %p829_p11  ;;  %s553_s30 = sshll.u32 %s624_s29, 4  ;;  %s554_s30 = int_to_ptr.vmem [resolvable:$false] %s553_s30 }
  0x40   : > { %s555_s5 = scalar_lea.vmem %s554_s30, 512  ;;  %p556_p4 = scmp.lt.s32.totalorder %s769_s19, %s554_s30 }
  0x41   : > { %p552_p13 = pneg %p551_p12  ;;  %p557_p10 = scmp.lt.s32.totalorder %s555_s5, %s549_s28 }
  0x43   : > { %p558_p1 = por %p557_p10, %p556_p4 }
  0x45   : > { %p559_p3 = pnand %p558_p1, %p552_p13 }
  0xbd   : > { %v194_v6 = vpop.permute.xlu0 %193 }
 0x110   : > { %v266_v7 = vpop.f32.mrb[0].mxu0 }
 0x111   : > { %v340_v8 = vpop.f32.mrb[0].mxu1  ;;  %v267_v9 = vadd.f32 %v266_v7, %v194_v6  ;;  %v457_v11 = vpop.f32.mrb[1].mxu0 }
 0x112   : > { %v341_v10 = vadd.f32 %v340_v8, %v194_v6  ;;  %v462_v12 = vpop.f32.mrb[1].mxu1 }
 0x113   : > { %v270_v13 = vmax.f32 %v267_v9, 0.0 }
 0x114   : > { %v344_v14 = vmax.f32 %v341_v10, 0.0 }
 0x115   : > { %271 = vst [vmem:[%s187_s8] sm:$0xff] %v270_v13 }
 0x116   : > { %444 = vst [vmem:[%s187_s8 + $0x8] sm:$0xff] %v344_v14 }
 0x117   : > { %562 = shalt.err (!%p559_p3)
}
 0x118   : > { %s563_s10 = scalar_lea.hbm %s774_s27, 256  ;;  %s567_s4 = scalar_lea.hbm %s821_s3, 512 }
 0x119   : > { %p564_p5 = scmp.ne.s32.totalorder %s774_s27, %s563_s10  ;;  %p568_p9 = scmp.lt.u32.totalorder %s774_s27, %s821_s3 }
 0x11a   : > { %p569_p0 = scmp.lt.u32.totalorder %s567_s4, %s563_s10  ;;  %p571_p6 = scmp.lt.u32.totalorder %s563_s10, %s774_s27 }
 0x11b   : > { %p565_p7 = pnand %p564_p5, %p829_p11 }
 0x11c   : > { %p570_p2 = por %p569_p0, %p568_p9 }
 0x11d   : > { %p566_p8 = pneg %p565_p7 }
 0x11e   : > { %p572_p12 = por %p571_p6, %p570_p2 }
 0x120   : > { %p573_p13 = pnand %p572_p12, %p566_p8 }
 0x122   : > { %576 = shalt.err (!%p573_p13)
}
 0x123   : > { %s625_s7 = smov 128   ;;  %s626_s8 = smov 256  }
 0x124   : > { %s627_s20 = smov 8  }
 0x125   : > { %465 = dma.vmem_to_hbm [thread:$0]  (%p829_p11), %s769_s19, 256, %s774_s27, %s348_s16, %s625_s7, %s626_s8, %s627_s20  }
 0x126 PF: > { %s375_s22 = sand.u32 1, %s603_s12   ;;  %p830_p4 = scmp.ne.s32.totalorder %s826_s25, 0 }
 0x127   : > { %p831_p10 = scmp.ge.s32.totalorder %s615_s15, 2  ;;  %s376_s26 = scalar_lea.sflag [#allocation4], %s375_s22 }
 0x129   : > { %p472_p1 = pnand %p831_p10, %p830_p4 }
 0x12b   : > { %598 = dma.done.wait (!%p472_p1), %s376_s26, 256  }
 0x12c   : > { %600 = vsyncadd (!%p472_p1), %s376_s26, 4294967040  ;;  %p16_p3 = scmp.ge.s32.totalorder %s673_s18, 4   ;;  %s832_s12 = smov %s607_s13 }
 0x12d   : > { %s833_s13 = smov %s611_s14  ;;  %s834_s14 = smov %s685_s21 }
 0x12e   : > { %s835_s15 = smov %s673_s18  ;;  %18 = sbr.rel (!%p16_p3) target bundleno = 5 (0x5), region = 79 }
 0x135   :  { %381 = vsyncpa [#allocation3], 1 }
 0x136   :  { %383 = vsyncpa [#allocation3 + $0x1], 1 }
 0x137   :  { %384 = vsyncpa [#allocation4], 1 }
 0x138   :  { %386 = vsyncpa [#allocation4 + $0x1], 1 }

</bundles_post_ra>
